<compile_context>
chip_gen: v7x
topology: tpu7x:2x2x1
jax: 0.10.0
libtpu: 0.0.40
codegen_flags: <defaults>
</compile_context>

<pallas_src>
import jax
import jax.numpy as jnp
from jax import lax
from jax.experimental import pallas as pl
from jax.experimental.pallas import tpu as pltpu

LOG_SIG_MAX = 2.0
LOG_SIG_MIN = -20.0


def _round_up(x, m):
    return ((x + m - 1) // m) * m


def _policy_kernel(state_ref, w1_ref, b1_ref, w2_ref, b2_ref,
                   wh_ref, bh_ref, out_ref):
    # layer 1: (TB, In_p) @ (In_p, H_p) + (1, H_p) -> relu   (bf16 in, f32 acc)
    x = jnp.dot(state_ref[...].astype(jnp.bfloat16), w1_ref[...],
                preferred_element_type=jnp.float32)
    x = jnp.maximum(x + b1_ref[...], 0.0)

    # layer 2: (TB, H_p) @ (H_p, H_p) + (1, H_p) -> relu
    x = jnp.dot(x.astype(jnp.bfloat16), w2_ref[...],
                preferred_element_type=jnp.float32)
    x = jnp.maximum(x + b2_ref[...], 0.0)

    # fused heads: (TB, H_p) @ (H_p, 2*A_p) + (1, 2*A_p)
    y = jnp.dot(x.astype(jnp.bfloat16), wh_ref[...],
                preferred_element_type=jnp.float32)
    y = y + bh_ref[...]

    # clamp only the log_std half (columns >= A_p); pure VPU, no data movement.
    half = y.shape[1] // 2
    col = lax.broadcasted_iota(jnp.int32, y.shape, 1)
    y = jnp.where(col >= half, jnp.clip(y, LOG_SIG_MIN, LOG_SIG_MAX), y)

    out_ref[...] = y.astype(out_ref.dtype)


def pad_and_fuse_params(params, num_inputs, num_actions, hidden_dim):
    """One-time preprocessing: zero-pad to lane multiples, fuse heads, bf16 weights."""
    in_p = _round_up(num_inputs, 128)
    h_p = _round_up(hidden_dim, 128)
    a_p = _round_up(num_actions, 128)

    def pad2(w, r, c):
        return jnp.pad(w, ((0, r - w.shape[0]), (0, c - w.shape[1])))

    w1 = pad2(params["w1"], in_p, h_p).astype(jnp.bfloat16)
    b1 = pad2(params["b1"], 1, h_p).astype(jnp.float32)
    w2 = pad2(params["w2"], h_p, h_p).astype(jnp.bfloat16)
    b2 = pad2(params["b2"], 1, h_p).astype(jnp.float32)

    wm = pad2(params["wm"], h_p, a_p)
    ws = pad2(params["ws"], h_p, a_p)
    wh = jnp.concatenate([wm, ws], axis=1).astype(jnp.bfloat16)   # (H_p, 2*A_p)
    bm = pad2(params["bm"], 1, a_p)
    bs = pad2(params["bs"], 1, a_p)
    bh = jnp.concatenate([bm, bs], axis=1).astype(jnp.float32)    # (1, 2*A_p)

    return {"w1": w1, "b1": b1, "w2": w2, "b2": b2, "wh": wh, "bh": bh,
            "in_p": in_p, "h_p": h_p, "a_p": a_p}


def gaussian_policy_forward(state, fused, num_actions):
    """state: (B, num_inputs) f32. fused: output of pad_and_fuse_params."""
    in_p, h_p, a_p = fused["in_p"], fused["h_p"], fused["a_p"]
    w2dim = 2 * a_p
    B, num_inputs = state.shape

    # batch tile: multiple of 8 sublanes, capped so VMEM stays small even on v7x (64 MiB)
    tb = 256 if B >= 256 else _round_up(B, 8)
    b_p = _round_up(B, tb)

    state_p = jnp.pad(state, ((0, b_p - B), (0, in_p - num_inputs)))
    grid = (b_p // tb,)

    const = lambda shape: pl.BlockSpec(shape, lambda i: (0, 0))
    in_specs = [
        pl.BlockSpec((tb, in_p), lambda i: (i, 0)),   # state: tiled over batch
        const((in_p, h_p)), const((1, h_p)),          # w1, b1 (resident)
        const((h_p, h_p)), const((1, h_p)),           # w2, b2 (resident)
        const((h_p, w2dim)), const((1, w2dim)),       # fused head w, b (resident)
    ]
    out_specs = pl.BlockSpec((tb, w2dim), lambda i: (i, 0))

    flops = 2 * b_p * (in_p * h_p + h_p * h_p + h_p * w2dim)
    bytes_accessed = (
        state_p.size * 4
        + fused["w1"].size * 2 + fused["w2"].size * 2 + fused["wh"].size * 2
        + (fused["b1"].size + fused["b2"].size + fused["bh"].size) * 4
        + b_p * w2dim * 4
    )

    out = pl.pallas_call(
        _policy_kernel,
        out_shape=jax.ShapeDtypeStruct((b_p, w2dim), jnp.float32),
        grid_spec=pl.GridSpec(grid=grid, in_specs=in_specs, out_specs=out_specs),
        compiler_params=pltpu.CompilerParams(dimension_semantics=("parallel",)),
        cost_estimate=pl.CostEstimate(flops=flops, transcendentals=0,
                                      bytes_accessed=bytes_accessed),
    )(state_p, fused["w1"], fused["b1"], fused["w2"], fused["b2"],
      fused["wh"], fused["bh"])

    mean = out[:B, :num_actions]
    log_std = out[:B, a_p:a_p + num_actions]
    return mean, log_std


def init_params(key, num_inputs, num_actions, hidden_dim):
    """Deterministic xavier_uniform weights (gain=1), zero biases.
    Weights stored as (in_dim, out_dim) — pre-transposed vs. nn.Linear."""
    def xavier(k, fan_in, fan_out):
        limit = jnp.sqrt(6.0 / (fan_in + fan_out))
        # nn.Linear weight is (out, in); sample that way and transpose to (in, out).
        w = jax.random.uniform(k, (fan_out, fan_in), jnp.float32, -limit, limit)
        return w.T

    k1, k2, k3, k4 = jax.random.split(key, 4)
    return {
        "w1": xavier(k1, num_inputs, hidden_dim),
        "b1": jnp.zeros((1, hidden_dim), jnp.float32),
        "w2": xavier(k2, hidden_dim, hidden_dim),
        "b2": jnp.zeros((1, hidden_dim), jnp.float32),
        "wm": xavier(k3, hidden_dim, num_actions),
        "bm": jnp.zeros((1, num_actions), jnp.float32),
        "ws": xavier(k4, hidden_dim, num_actions),
        "bs": jnp.zeros((1, num_actions), jnp.float32),
    }


if __name__ == "__main__":
    key = jax.random.PRNGKey(0)
    k_state, k_params = jax.random.split(key)

    B, num_inputs, num_actions, hidden_dim = 8, 16, 4, 32

    state = jax.random.normal(k_state, (B, num_inputs), jnp.float32)
    params = init_params(k_params, num_inputs, num_actions, hidden_dim)
    fused = pad_and_fuse_params(params, num_inputs, num_actions, hidden_dim)

    mean, log_std = gaussian_policy_forward(state, fused, num_actions)
    jax.block_until_ready((mean, log_std))

    # reference check in plain JAX (f32; kernel uses bf16 matmul operands
    # with f32 accumulation, so compare with a loose tolerance).
    x = jnp.maximum(state @ params["w1"] + params["b1"], 0.0)
    x = jnp.maximum(x @ params["w2"] + params["b2"], 0.0)
    mean_ref = x @ params["wm"] + params["bm"]
    log_std_ref = jnp.clip(x @ params["ws"] + params["bs"], LOG_SIG_MIN, LOG_SIG_MAX)

    assert mean.shape == (B, num_actions) and log_std.shape == (B, num_actions)
    assert jnp.allclose(mean, mean_ref, atol=5e-2, rtol=5e-2)
    assert jnp.allclose(log_std, log_std_ref, atol=5e-2, rtol=5e-2)
    assert bool(jnp.all(log_std <= LOG_SIG_MAX)) and bool(jnp.all(log_std >= LOG_SIG_MIN))

    print("KERNEL_OK")
</pallas_src>

<mosaic_0001>
module attributes {stable_mosaic.version = 11 : i64} {
  func.func @_policy_kernel(%arg0: i32, %arg1: memref<8x128xf32, #tpu.memory_space<vmem>>, %arg2: memref<128x128xbf16, #tpu.memory_space<vmem>>, %arg3: memref<1x128xf32, #tpu.memory_space<vmem>>, %arg4: memref<128x128xbf16, #tpu.memory_space<vmem>>, %arg5: memref<1x128xf32, #tpu.memory_space<vmem>>, %arg6: memref<128x256xbf16, #tpu.memory_space<vmem>>, %arg7: memref<1x256xf32, #tpu.memory_space<vmem>>, %arg8: memref<8x256xf32, #tpu.memory_space<vmem>>) attributes {dimension_semantics = [#tpu.dimension_semantics<parallel>], iteration_bounds = array<i64: 1>, scalar_prefetch = 0 : i64, scratch_operands = 0 : i64, tpu.core_type = #tpu.core_type<tc>, window_params = [{transform_indices = @transform_0, window_bounds = array<i64: 8, 128>}, {pipeline_mode = #tpu.pipeline_mode<synchronous>, transform_indices = @transform_1, window_bounds = array<i64: 128, 128>}, {pipeline_mode = #tpu.pipeline_mode<synchronous>, transform_indices = @transform_2, window_bounds = array<i64: 1, 128>}, {pipeline_mode = #tpu.pipeline_mode<synchronous>, transform_indices = @transform_3, window_bounds = array<i64: 128, 128>}, {pipeline_mode = #tpu.pipeline_mode<synchronous>, transform_indices = @transform_4, window_bounds = array<i64: 1, 128>}, {pipeline_mode = #tpu.pipeline_mode<synchronous>, transform_indices = @transform_5, window_bounds = array<i64: 128, 256>}, {pipeline_mode = #tpu.pipeline_mode<synchronous>, transform_indices = @transform_6, window_bounds = array<i64: 1, 256>}, {transform_indices = @transform_7, window_bounds = array<i64: 8, 256>}]} {
    %c0 = arith.constant 0 : index
    %c0_0 = arith.constant 0 : index
    %0 = vector.load %arg1[%c0, %c0_0] : memref<8x128xf32, #tpu.memory_space<vmem>>, vector<8x128xf32>
    %1 = arith.truncf %0 : vector<8x128xf32> to vector<8x128xbf16>
    %c0_1 = arith.constant 0 : index
    %c0_2 = arith.constant 0 : index
    %2 = vector.load %arg2[%c0_1, %c0_2] : memref<128x128xbf16, #tpu.memory_space<vmem>>, vector<128x128xbf16>
    %cst = arith.constant dense<0.000000e+00> : vector<8x128xf32>
    %3 = tpu.matmul %1, %2, %cst {dimension_numbers = #tpu.dot_dimension_numbers<[1], [0], [0], [1], [0, 0, 1, 1], [], []>} : vector<8x128xbf16>, vector<128x128xbf16>, vector<8x128xf32> -> vector<8x128xf32>
    %c0_3 = arith.constant 0 : index
    %c0_4 = arith.constant 0 : index
    %4 = vector.load %arg3[%c0_3, %c0_4] : memref<1x128xf32, #tpu.memory_space<vmem>>, vector<1x128xf32>
    %5 = vector.broadcast %4 : vector<1x128xf32> to vector<8x128xf32>
    %6 = arith.addf %3, %5 : vector<8x128xf32>
    %cst_5 = arith.constant 0.000000e+00 : f32
    %7 = vector.broadcast %cst_5 : f32 to vector<8x128xf32>
    %8 = arith.maximumf %6, %7 : vector<8x128xf32>
    %9 = arith.truncf %8 : vector<8x128xf32> to vector<8x128xbf16>
    %c0_6 = arith.constant 0 : index
    %c0_7 = arith.constant 0 : index
    %10 = vector.load %arg4[%c0_6, %c0_7] : memref<128x128xbf16, #tpu.memory_space<vmem>>, vector<128x128xbf16>
    %cst_8 = arith.constant dense<0.000000e+00> : vector<8x128xf32>
    %11 = tpu.matmul %9, %10, %cst_8 {dimension_numbers = #tpu.dot_dimension_numbers<[1], [0], [0], [1], [0, 0, 1, 1], [], []>} : vector<8x128xbf16>, vector<128x128xbf16>, vector<8x128xf32> -> vector<8x128xf32>
    %c0_9 = arith.constant 0 : index
    %c0_10 = arith.constant 0 : index
    %12 = vector.load %arg5[%c0_9, %c0_10] : memref<1x128xf32, #tpu.memory_space<vmem>>, vector<1x128xf32>
    %13 = vector.broadcast %12 : vector<1x128xf32> to vector<8x128xf32>
    %14 = arith.addf %11, %13 : vector<8x128xf32>
    %cst_11 = arith.constant 0.000000e+00 : f32
    %15 = vector.broadcast %cst_11 : f32 to vector<8x128xf32>
    %16 = arith.maximumf %14, %15 : vector<8x128xf32>
    %17 = arith.truncf %16 : vector<8x128xf32> to vector<8x128xbf16>
    %c0_12 = arith.constant 0 : index
    %c0_13 = arith.constant 0 : index
    %18 = vector.load %arg6[%c0_12, %c0_13] : memref<128x256xbf16, #tpu.memory_space<vmem>>, vector<128x256xbf16>
    %cst_14 = arith.constant dense<0.000000e+00> : vector<8x256xf32>
    %19 = tpu.matmul %17, %18, %cst_14 {dimension_numbers = #tpu.dot_dimension_numbers<[1], [0], [0], [1], [0, 0, 1, 1], [], []>} : vector<8x128xbf16>, vector<128x256xbf16>, vector<8x256xf32> -> vector<8x256xf32>
    %c0_15 = arith.constant 0 : index
    %c0_16 = arith.constant 0 : index
    %20 = vector.load %arg7[%c0_15, %c0_16] : memref<1x256xf32, #tpu.memory_space<vmem>>, vector<1x256xf32>
    %21 = vector.broadcast %20 : vector<1x256xf32> to vector<8x256xf32>
    %22 = arith.addf %19, %21 : vector<8x256xf32>
    %23 = tpu.iota {dimensions = array<i32: 1>} : vector<8x256xi32>
    %c128_i32 = arith.constant 128 : i32
    %24 = vector.broadcast %c128_i32 : i32 to vector<8x256xi32>
    %25 = arith.cmpi sge, %23, %24 : vector<8x256xi32>
    %cst_17 = arith.constant -2.000000e+01 : f32
    %cst_18 = arith.constant 2.000000e+00 : f32
    %26 = vector.broadcast %cst_17 : f32 to vector<8x256xf32>
    %27 = arith.maximumf %26, %22 : vector<8x256xf32>
    %28 = vector.broadcast %cst_18 : f32 to vector<8x256xf32>
    %29 = arith.minimumf %28, %27 : vector<8x256xf32>
    %30 = arith.select %25, %29, %22 : vector<8x256xi1>, vector<8x256xf32>
    %c0_19 = arith.constant 0 : index
    %c0_20 = arith.constant 0 : index
    %31 = vector.load %arg8[%c0_19, %c0_20] : memref<8x256xf32, #tpu.memory_space<vmem>>, vector<8x256xf32>
    tpu.vector_store %arg8[%c0_19, %c0_20], %30 {strides = array<i32>} : memref<8x256xf32, #tpu.memory_space<vmem>>, vector<8x256xf32>,
    return
  }
  func.func @transform_0(%arg0: i32) -> (i32, i32) {
    %c0_i32 = arith.constant 0 : i32
    %c0_i32_0 = arith.constant 0 : i32
    return %arg0, %c0_i32 : i32, i32
  }
  func.func @transform_1(%arg0: i32) -> (i32, i32) {
    %c0_i32 = arith.constant 0 : i32
    %c0_i32_0 = arith.constant 0 : i32
    %c0_i32_1 = arith.constant 0 : i32
    return %c0_i32, %c0_i32_0 : i32, i32
  }
  func.func @transform_2(%arg0: i32) -> (i32, i32) {
    %c0_i32 = arith.constant 0 : i32
    %c0_i32_0 = arith.constant 0 : i32
    %c0_i32_1 = arith.constant 0 : i32
    return %c0_i32, %c0_i32_0 : i32, i32
  }
  func.func @transform_3(%arg0: i32) -> (i32, i32) {
    %c0_i32 = arith.constant 0 : i32
    %c0_i32_0 = arith.constant 0 : i32
    %c0_i32_1 = arith.constant 0 : i32
    return %c0_i32, %c0_i32_0 : i32, i32
  }
  func.func @transform_4(%arg0: i32) -> (i32, i32) {
    %c0_i32 = arith.constant 0 : i32
    %c0_i32_0 = arith.constant 0 : i32
    %c0_i32_1 = arith.constant 0 : i32
    return %c0_i32, %c0_i32_0 : i32, i32
  }
  func.func @transform_5(%arg0: i32) -> (i32, i32) {
    %c0_i32 = arith.constant 0 : i32
    %c0_i32_0 = arith.constant 0 : i32
    %c0_i32_1 = arith.constant 0 : i32
    return %c0_i32, %c0_i32_0 : i32, i32
  }
  func.func @transform_6(%arg0: i32) -> (i32, i32) {
    %c0_i32 = arith.constant 0 : i32
    %c0_i32_0 = arith.constant 0 : i32
    %c0_i32_1 = arith.constant 0 : i32
    return %c0_i32, %c0_i32_0 : i32, i32
  }
  func.func @transform_7(%arg0: i32) -> (i32, i32) {
    %c0_i32 = arith.constant 0 : i32
    %c0_i32_0 = arith.constant 0 : i32
    return %arg0, %c0_i32 : i32, i32
  }
}

</mosaic_0001>

<bundles_post_ra>
// kernel: tpu_custom_call.1
= control target key start
LH: loop header
LB: loop body
LE: loop exit
PB: predicated region body
PF: predicated region fallthrough
CT: control target
= control target key end

     0   :  { %12 = vsyncpa [#allocation3], 0  ;;  %s877_s0 = inlined_call_operand.hbm [shape: f32[8,128], index: 0, kind: input, shape index: {}]   ;;  %s878_s1 = inlined_call_operand.hbm [shape: bf16[128,128], index: 1, kind: input, shape index: {}]   ;;  %s879_s2 = inlined_call_operand.vmem [shape: f32[1,128], index: 2, kind: input, shape index: {}]   ;;  %s880_s3 = inlined_call_operand.hbm [shape: bf16[128,128], index: 3, kind: input, shape index: {}]   ;;  %s881_s4 = inlined_call_operand.vmem [shape: f32[1,128], index: 4, kind: input, shape index: {}]   ;;  %s882_s5 = inlined_call_operand.hbm [shape: bf16[128,256], index: 5, kind: input, shape index: {}]   ;;  %s883_s6 = inlined_call_operand.vmem [shape: f32[1,256], index: 6, kind: input, shape index: {}]   ;;  %s884_s7 = inlined_call_operand.hbm [shape: f32[8,256], index: 7, kind: output, shape index: {}]  }
   0x1   :  { %13 = vsyncpa [#allocation6], 0 }
   0x2   :  { %14 = vsyncpa [#allocation9], 0 }
   0x3   :  { %15 = vsyncpa [#allocation4], 0  ;;  %s750_s24 = smov [#allocation5]   ;;  %s632_s28 = scalar_lea.hbm %s878_s1, 1024 }
   0x4   :  { %s31_s25 = sshll.u32 %s750_s24, 4  ;;  %p633_p0 = scmp.ne.s32.totalorder %s878_s1, %s632_s28  ;;  %s32_s25 = int_to_ptr.vmem [resolvable:$true] %s31_s25 }
   0x5   :  { %p636_p1 = scmp.lt.u32.totalorder %s632_s28, %s878_s1 }
   0x7   :  { %p638_p2 = pnand %p636_p1, %p633_p0 }
   0x9   :  { %641 = shalt.err (!%p638_p2)
}
   0xa   :  { %s642_s10 = scalar_lea.vmem %s32_s25, 1024  ;;  %p647_p4 = scmp.lt.s32.totalorder %s32_s25, %s32_s25 }
   0xb   :  { %p643_p3 = scmp.ne.s32.totalorder %s32_s25, %s642_s10  ;;  %p648_p5 = scmp.lt.s32.totalorder %s642_s10, %s642_s10 }
   0xd   :  { %p649_p6 = por %p648_p5, %p647_p4 }
   0xf   :  { %p650_p7 = pnand %p649_p6, %p643_p3 }
  0x11   :  { %653 = shalt.err (!%p650_p7)
}
  0x12   :  { %s751_s11 = smov 64   ;;  %s752_s12 = smov 4  }
  0x13   :  { %37 = dma.hbm_to_vmem [thread:$0]  %s878_s1, 1024, %s32_s25, [#allocation6], %s751_s11, %s751_s11, %s752_s12  }
  0x14   :  { %s753_s15 = smov [#allocation2]   ;;  %s754_s17 = smov [#allocation7]  }
  0x15   :  { %s22_s16 = sshll.u32 %s753_s15, 4  ;;  %s45_s18 = sshll.u32 %s754_s17, 4  ;;  %s23_s16 = int_to_ptr.vmem [resolvable:$true] %s22_s16  ;;  %s46_s18 = int_to_ptr.vmem [resolvable:$true] %s45_s18 }
  0x16   :  { %s654_s21 = scalar_lea.hbm %s877_s0, 128 }
  0x17   :  { %p655_p8 = scmp.ne.s32.totalorder %s877_s0, %s654_s21  ;;  %p658_p9 = scmp.lt.u32.totalorder %s654_s21, %s877_s0 }
  0x19   :  { %p660_p10 = pnand %p658_p9, %p655_p8 }
  0x1b   :  { %663 = shalt.err (!%p660_p10)
}
  0x1c   :  { %s664_s1 = scalar_lea.vmem %s23_s16, 128  ;;  %p669_p12 = scmp.lt.s32.totalorder %s23_s16, %s23_s16 }
  0x1d   :  { %p665_p11 = scmp.ne.s32.totalorder %s23_s16, %s664_s1  ;;  %p670_p13 = scmp.lt.s32.totalorder %s664_s1, %s664_s1 }
  0x1f   :  { %p671_p0 = por %p670_p13, %p669_p12 }
  0x21   :  { %p672_p1 = pnand %p671_p0, %p665_p11 }
  0x23   :  { %675 = shalt.err (!%p672_p1)
}
  0x24   :  { %25 = dma.hbm_to_vmem [thread:$0]  %s877_s0, 128, %s23_s16, [#allocation3]  }
  0x25   :  { %s676_s30 = scalar_lea.hbm %s880_s3, 1024 }
  0x26   :  { %p677_p2 = scmp.ne.s32.totalorder %s880_s3, %s676_s30  ;;  %p680_p3 = scmp.lt.u32.totalorder %s676_s30, %s880_s3 }
  0x28   :  { %p682_p4 = pnand %p680_p3, %p677_p2 }
  0x2a   :  { %685 = shalt.err (!%p682_p4)
}
  0x2b   :  { %s686_s14 = scalar_lea.vmem %s46_s18, 1024  ;;  %p691_p6 = scmp.lt.s32.totalorder %s46_s18, %s46_s18 }
  0x2c   :  { %p687_p5 = scmp.ne.s32.totalorder %s46_s18, %s686_s14  ;;  %p692_p7 = scmp.lt.s32.totalorder %s686_s14, %s686_s14 }
  0x2e   :  { %p693_p8 = por %p692_p7, %p691_p6 }
  0x30   :  { %p694_p9 = pnand %p693_p8, %p687_p5 }
  0x32   :  { %697 = shalt.err (!%p694_p9)
}
  0x33   :  { %51 = dma.hbm_to_vmem [thread:$0]  %s880_s3, 1024, %s46_s18, [#allocation6], %s751_s11, %s751_s11, %s752_s12  }
  0x34   :  { %s755_s16 = smov [#allocation8]   ;;  %s698_s21 = scalar_lea.hbm %s882_s5, 2048 }
  0x35   :  { %s59_s17 = sshll.u32 %s755_s16, 4  ;;  %p699_p10 = scmp.ne.s32.totalorder %s882_s5, %s698_s21  ;;  %s60_s17 = int_to_ptr.vmem [resolvable:$true] %s59_s17 }
  0x36   :  { %p702_p11 = scmp.lt.u32.totalorder %s698_s21, %s882_s5 }
  0x38   :  { %p704_p12 = pnand %p702_p11, %p699_p10 }
  0x3a   :  { %707 = shalt.err (!%p704_p12)
}
  0x3b   :  { %s708_s1 = scalar_lea.vmem %s60_s17, 2048  ;;  %p713_p0 = scmp.lt.s32.totalorder %s60_s17, %s60_s17 }
  0x3c   :  { %p709_p13 = scmp.ne.s32.totalorder %s60_s17, %s708_s1  ;;  %p714_p1 = scmp.lt.s32.totalorder %s708_s1, %s708_s1 }
  0x3e   :  { %p715_p2 = por %p714_p1, %p713_p0 }
  0x40   :  { %p716_p3 = pnand %p715_p2, %p709_p13 }
  0x42   :  { %719 = shalt.err (!%p716_p3)
}
  0x43   :  { %s756_s3 = smov 128   ;;  %s757_s11 = smov 8  }
  0x44   :  { %65 = dma.hbm_to_vmem [thread:$0]  %s882_s5, 2048, %s60_s17, [#allocation9], %s756_s3, %s756_s3, %s757_s11  }
  0x45   :  { %742 = dma.done.wait [#allocation3], 128  }
  0x46   :  { %743 = vsyncadd [#allocation3], 4294967168 }
  0x47   :  { %744 = dma.done.wait [#allocation6], 2048  }
  0x48   :  { %745 = vsyncadd [#allocation6], 4294965248 }
  0x49   :  { %746 = dma.done.wait [#allocation9], 2048  }
  0x4a   :  { %747 = vsyncadd [#allocation9], 4294965248  ;;  %v758_v0 = vmov 0.0   ;;  %vm759_vm0 = vmmov 0   ;;  %v592_v1 = vld [vmem:[#allocation5] sm:$0xff]   ;;  %v593_v2 = vld [vmem:[#allocation5 + $0x8] sm:$0xff]   ;;  %v327_v52 = vlaneseq }
  0x4b   :  { %540 = vmatprep.subr.bf16.mxu0 %v758_v0  ;;  %556 = vmatprep.mubr.msk.bf16.mxu0 %vm759_vm0, %v758_v0  ;;  %v594_v3 = vld [vmem:[#allocation5 + $0x10] sm:$0xff]   ;;  %v600_v4 = vld [vmem:[#allocation7] sm:$0xff]   ;;  %v595_v5 = vld [vmem:[#allocation5 + $0x18] sm:$0xff]   ;;  %v760_v43 = vmov 0  }
  0x4c   :  { %560 = vmatprep.subr.bf16.mxu1 %v758_v0  ;;  %576 = vmatprep.mubr.msk.bf16.mxu1 %vm759_vm0, %v758_v0  ;;  %v601_v6 = vld [vmem:[#allocation7 + $0x8] sm:$0xff]   ;;  %v596_v7 = vld [vmem:[#allocation5 + $0x20] sm:$0xff]   ;;  %v602_v8 = vld [vmem:[#allocation7 + $0x10] sm:$0xff]   ;;  %v328_v53 = vshrl.u32 %v327_v52, 7 }
  0x4d   :  { %541 = vmatpush3.bf16.msra.mxu0 %v592_v1  ;;  %561 = vmatpush3.bf16.msra.mxu1 %v600_v4  ;;  %v597_v9 = vld [vmem:[#allocation5 + $0x28] sm:$0xff]   ;;  %v603_v10 = vld [vmem:[#allocation7 + $0x18] sm:$0xff]   ;;  %v598_v11 = vld [vmem:[#allocation5 + $0x30] sm:$0xff]  }
  0x4e   :  { %542 = vmatprep.subr.bf16.mxu0 %v758_v0  ;;  %562 = vmatprep.subr.bf16.mxu1 %v758_v0  ;;  %v604_v12 = vld [vmem:[#allocation7 + $0x20] sm:$0xff]   ;;  %v599_v13 = vld [vmem:[#allocation5 + $0x38] sm:$0xff]   ;;  %v605_v15 = vld [vmem:[#allocation7 + $0x28] sm:$0xff]   ;;  %v329_v54 = vsub.s32 0, %v328_v53  ;;  %v333_v56 = vsub.s32 1, %v328_v53 }
  0x4f   :  { %v81_v14 = vld [vmem:[#allocation2] sm:$0xff]  ;;  %v606_v17 = vld [vmem:[#allocation7 + $0x30] sm:$0xff]   ;;  %v608_v19 = vld [vmem:[#allocation8] ss:$8 sps:$4 sm:$0xff]  }
  0x50   :  { %v82_v16 = vpack.c.bf16 %v81_v14, %v81_v14  ;;  %v607_v18 = vld [vmem:[#allocation7 + $0x38] sm:$0xff]   ;;  %v610_v20 = vld [vmem:[#allocation8 + $0x4] ss:$8 sps:$4 sm:$0xff]   ;;  %v614_v24 = vld [vmem:[#allocation8 + $0x20] ss:$8 sps:$4 sm:$0xff]  }
  0x51   :  { %543 = vmatpush3.bf16.msra.mxu0 %v593_v2  ;;  %563 = vmatpush3.bf16.msra.mxu1 %v601_v6  ;;  %v613_v21 = vld [vmem:[#allocation8 + $0x14] ss:$8 sps:$4 sm:$0xff]   ;;  %v611_v22 = vld [vmem:[#allocation8 + $0x10] ss:$8 sps:$4 sm:$0xff]   ;;  %v616_v23 = vld [vmem:[#allocation8 + $0x24] ss:$8 sps:$4 sm:$0xff]  }
  0x52   :  { %544 = vmatprep.subr.bf16.mxu0 %v758_v0  ;;  %564 = vmatprep.subr.bf16.mxu1 %v758_v0  ;;  %v619_v25 = vld [vmem:[#allocation8 + $0x34] ss:$8 sps:$4 sm:$0xff]   ;;  %v617_v26 = vld [vmem:[#allocation8 + $0x30] ss:$8 sps:$4 sm:$0xff]   ;;  %v622_v27 = vld [vmem:[#allocation8 + $0x44] ss:$8 sps:$4 sm:$0xff]  }
  0x53   :  { %v620_v28 = vld [vmem:[#allocation8 + $0x40] ss:$8 sps:$4 sm:$0xff]   ;;  %v625_v29 = vld [vmem:[#allocation8 + $0x54] ss:$8 sps:$4 sm:$0xff]   ;;  %v623_v30 = vld [vmem:[#allocation8 + $0x50] ss:$8 sps:$4 sm:$0xff]  }
  0x54   :  { %v628_v31 = vld [vmem:[#allocation8 + $0x64] ss:$8 sps:$4 sm:$0xff]   ;;  %v626_v32 = vld [vmem:[#allocation8 + $0x60] ss:$8 sps:$4 sm:$0xff]   ;;  %v488_v33 = vld [vmem:[%s879_s2] ss:$0 sm:$0xff] }
  0x55   :  { %545 = vmatpush3.bf16.msra.mxu0 %v594_v3  ;;  %565 = vmatpush3.bf16.msra.mxu1 %v602_v8  ;;  %v631_v41 = vld [vmem:[#allocation8 + $0x74] ss:$8 sps:$4 sm:$0xff]   ;;  %v629_v42 = vld [vmem:[#allocation8 + $0x70] ss:$8 sps:$4 sm:$0xff]  }
  0x56   :  { %546 = vmatprep.subr.bf16.mxu0 %v758_v0  ;;  %566 = vmatprep.subr.bf16.mxu1 %v758_v0  ;;  %v497_v44 = vld [vmem:[%s881_s4] ss:$0 sm:$0xff]  ;;  %s761_s4 = smov [#allocation10]  }
  0x57   :  { %v325_v55 = vld [vmem:[%s883_s6] sm:$0x3]  ;;  %s477_s30 = sshll.u32 %s761_s4, 4  ;;  %s478_s30 = int_to_ptr.vmem [resolvable:$true] %s477_s30 }
  0x58   :  { %v330_v57 = vrot.slane %v325_v55, %v329_v54  ;;  %v334_v58 = vrot.slane %v325_v55, %v333_v56  ;;  %s720_s8 = scalar_lea.vmem %s478_s30, 256  ;;  %p725_p5 = scmp.lt.s32.totalorder %s478_s30, %s478_s30 }
  0x59   :  { %547 = vmatpush3.bf16.msra.mxu0 %v595_v5  ;;  %567 = vmatpush3.bf16.msra.mxu1 %v603_v10  ;;  %p721_p4 = scmp.ne.s32.totalorder %s478_s30, %s720_s8  ;;  %p726_p6 = scmp.lt.s32.totalorder %s720_s8, %s720_s8 }
  0x5a   :  { %548 = vmatprep.subr.bf16.mxu0 %v758_v0  ;;  %568 = vmatprep.subr.bf16.mxu1 %v758_v0 }
  0x5b   :  { %p727_p7 = por %p726_p6, %p725_p5 }
  0x5d   :  { %549 = vmatpush3.bf16.msra.mxu0 %v596_v7  ;;  %569 = vmatpush3.bf16.msra.mxu1 %v604_v12  ;;  %p728_p8 = pnand %p727_p7, %p721_p4 }
  0x5e   :  { %550 = vmatprep.subr.bf16.mxu0 %v758_v0  ;;  %570 = vmatprep.subr.bf16.mxu1 %v758_v0 }
  0x61   :  { %551 = vmatpush3.bf16.msra.mxu0 %v597_v9  ;;  %571 = vmatpush3.bf16.msra.mxu1 %v605_v15 }
  0x62   :  { %552 = vmatprep.subr.bf16.mxu0 %v758_v0  ;;  %572 = vmatprep.subr.bf16.mxu1 %v758_v0 }
  0x65   :  { %553 = vmatpush3.bf16.msra.mxu0 %v598_v11  ;;  %573 = vmatpush3.bf16.msra.mxu1 %v606_v17 }
  0x66   :  { %554 = vmatprep.subr.bf16.mxu0 %v758_v0  ;;  %574 = vmatprep.subr.bf16.mxu1 %v758_v0 }
  0x69   :  { %555 = vmatpush3.bf16.msra.mxu0 %v599_v13  ;;  %575 = vmatpush3.bf16.msra.mxu1 %v607_v18 }
  0x6a   :  { %417 = vmatprep.subr.bf16.mxu0 %v610_v20 }
  0x6c   :  { %557 = vmatmul.mubr.bf16.vlgmr.msra.gmra.mrb[0].mxu0 %v82_v16 }
  0x6d   :  { %418 = vmatpush1.bf16.msra.mxu0 %v608_v19  ;;  %449 = vmatprep.mubr.bf16.mxu0 %v760_v43 }
  0x6e   :  { %419 = vmatprep.subr.bf16.mxu0 %v613_v21 }
  0x71   :  { %420 = vmatpush1.bf16.msra.mxu0 %v611_v22 }
  0x72   :  { %421 = vmatprep.subr.bf16.mxu0 %v616_v23 }
  0x75   :  { %422 = vmatpush1.bf16.msra.mxu0 %v614_v24 }
  0x76   :  { %423 = vmatprep.subr.bf16.mxu0 %v619_v25 }
  0x79   :  { %424 = vmatpush1.bf16.msra.mxu0 %v617_v26 }
  0x7a   :  { %425 = vmatprep.subr.bf16.mxu0 %v622_v27 }
  0x7d   :  { %426 = vmatpush1.bf16.msra.mxu0 %v620_v28 }
  0x7e   :  { %427 = vmatprep.subr.bf16.mxu0 %v625_v29 }
  0x81   :  { %428 = vmatpush1.bf16.msra.mxu0 %v623_v30 }
  0x82   :  { %429 = vmatprep.subr.bf16.mxu0 %v628_v31 }
  0x85   :  { %430 = vmatpush1.bf16.msra.mxu0 %v626_v32 }
  0x86   :  { %431 = vmatprep.subr.bf16.mxu0 %v631_v41 }
  0x89   :  { %432 = vmatpush1.bf16.msra.mxu0 %v629_v42 }
 0x13f   :  { %v188_v34 = vpop.f32.mrb[0].mxu0 }
 0x140   :  { %v189_v35 = vadd.f32 %v488_v33, %v188_v34  ;;  %v558_v36 = vpop.f32.mrb[1].mxu0 }
 0x141   :  { %v191_v37 = vpop.f32.mrb[2].mxu0 }
 0x142   :  { %v194_v38 = vmax.f32 %v189_v35, 0.0  ;;  %v559_v39 = vpop.f32.mrb[3].mxu0 }
 0x144   :  { %v195_v40 = vpack.c.bf16 %v194_v38, %v194_v38 }
 0x146   :  { %577 = vmatmul.mubr.bf16.vlgmr.msra.gmra.mrb[0].mxu1 %v195_v40 }
 0x219   :  { %v301_v45 = vpop.f32.mrb[0].mxu1 }
 0x21a   :  { %v302_v46 = vadd.f32 %v497_v44, %v301_v45  ;;  %v578_v47 = vpop.f32.mrb[1].mxu1 }
 0x21b   :  { %v304_v48 = vpop.f32.mrb[2].mxu1 }
 0x21c   :  { %v307_v49 = vmax.f32 %v302_v46, 0.0  ;;  %v579_v50 = vpop.f32.mrb[3].mxu1 }
 0x21e   :  { %v308_v51 = vpack.c.bf16 %v307_v49, %v307_v49 }
 0x220   :  { %450 = vmatmul.mubr.bf16.vlgmr.msra.gmra.mrb[4].mxu0 %v308_v51 }
 0x2f3   :  { %v451_v59 = vpop.f32.mrb[4].mxu0 }
 0x2f4   :  { %v452_v60 = vadd.f32 %v451_v59, %v330_v57  ;;  %v453_v61 = vpop.f32.mrb[5].mxu0 }
 0x2f5   :  { %v454_v62 = vadd.f32 %v453_v61, %v334_v58  ;;  %v455_v63 = vpop.f32.mrb[6].mxu0 }
 0x2f6   :  { %469 = vst [vmem:[#allocation10] sm:$0xff] %v452_v60  ;;  %v456_v0 = vpop.f32.mrb[7].mxu0 }
 0x2f7   :  { %v464_v1 = vmax.f32 %v454_v62, -20.0 }
 0x2f9   :  { %v466_v2 = vmin.f32 %v464_v1, 2.0 }
 0x2fb   :  { %470 = vst [vmem:[#allocation10 + $0x8] sm:$0xff] %v466_v2 }
 0x2fc   :  { %731 = shalt.err (!%p728_p8)
}
 0x2fd   :  { %s732_s10 = scalar_lea.hbm %s884_s7, 256 }
 0x2fe   :  { %p733_p9 = scmp.ne.s32.totalorder %s884_s7, %s732_s10  ;;  %p736_p10 = scmp.lt.u32.totalorder %s732_s10, %s884_s7 }
 0x300   :  { %p738_p11 = pnand %p736_p10, %p733_p9 }
 0x302   :  { %741 = shalt.err (!%p738_p11)
}
 0x303   :  { %480 = dma.vmem_to_hbm [thread:$0]  %s478_s30, 256, %s884_s7, [#allocation4]  }
 0x304   :  { %748 = dma.done.wait [#allocation4], 256  }
 0x305   :  { %749 = vsyncadd [#allocation4], 4294967040 }
 0x306   :  { %484 = vsyncpa [#allocation3], 1 }
 0x307   :  { %485 = vsyncpa [#allocation6], 1 }
 0x308   :  { %486 = vsyncpa [#allocation9], 1 }
 0x309   :  { %487 = vsyncpa [#allocation4], 1 }

</bundles_post_ra>
